<compile_context>
chip_gen: v6e
topology: v6e:2x2x1
jax: 0.10.0
libtpu: 0.0.40
codegen_flags: <defaults>
</compile_context>

<pallas_src>
import functools

import jax
import jax.numpy as jnp
from jax import lax
from jax.experimental import pallas as pl
from jax.experimental.pallas import tpu as pltpu


def _mlp_kernel(xt_ref, w1_ref, b1_ref, w2_ref, b2_ref, o_ref, *, chunk):
    H, D = w1_ref.shape
    tn = xt_ref.shape[1]
    n_chunks = tn // chunk

    # Grid-invariant parameters: load + lane-broadcast ONCE per grid step,
    # hoisted out of the chunk loop (loop-invariant values for the fori_loop).
    w1_cols = [jnp.broadcast_to(w1_ref[:, d:d + 1], (H, chunk)) for d in range(D)]
    b1b = jnp.broadcast_to(b1_ref[...], (H, chunk))          # (H, chunk)
    w2b = jnp.broadcast_to(w2_ref[...], (H, chunk))          # (H, chunk)
    b2 = b2_ref[0, 0]                                        # scalar from SMEM

    def body(c, carry):
        col = pl.multiple_of(c * chunk, 128)
        xc = xt_ref[:, pl.ds(col, chunk)]                    # (D, chunk)

        # fc: Linear(D, H) as D broadcast mul-adds on the VPU (an MXU matmul
        # with K=2 would be <2% utilized and pay full fill/drain latency).
        h = w1_cols[0] * xc[0:1, :]                          # (H, chunk)
        for d in range(1, D):                                # static unroll, tiny D
            h = h + w1_cols[d] * xc[d:d + 1, :]

        # bias + ReLU   (fc_drop has p=0.0 -> identity)
        h = jnp.maximum(h + b1b, 0.0)

        # fc2: Linear(H, 1) as multiply + cross-sublane reduce -> lane-dense
        # (1, chunk) result.
        out = jnp.sum(h * w2b, axis=0, keepdims=True) + b2   # (1, chunk)
        o_ref[:, pl.ds(col, chunk)] = out.astype(o_ref.dtype)
        return carry

    lax.fori_loop(0, n_chunks, body, 0, unroll=min(n_chunks, 4))


def nn_model_forward(x, w1, b1, w2, b2, *, tn=16384, chunk=256):
    """
    x : [N, D]  input (same layout the PyTorch module receives)
    w1: [H, D]  == fc.weight            (PyTorch (out, in) layout, no transpose)
    b1: [H, 1]  == fc.bias[:, None]
    w2: [H, 1]  == fc2.weight.T
    b2: [1, 1]  == fc2.bias[None, :]
    returns [N, 1] == NNModel.forward(x) for defaults (dropout=0, pooling=False,
    clamp=False)
    """
    N, D = x.shape
    H, D_w = w1.shape
    # Wrapper-side layout assertions so a config/layout change can't silently
    # produce wrong results.
    assert D_w == D, (w1.shape, x.shape)
    assert b1.shape == (H, 1), b1.shape
    assert w2.shape == (H, 1), w2.shape
    assert b2.shape == (1, 1), b2.shape
    assert chunk % 128 == 0 and tn % chunk == 0, (tn, chunk)

    # Clamp the row tile for small N so we don't pad a tiny batch out to the
    # full 16K tile; result stays a multiple of `chunk`.
    tn = min(tn, pl.cdiv(N, chunk) * chunk)
    n_pad = pl.cdiv(N, tn) * tn

    # Layout plumbing: rows -> lanes with a single fused transpose+pad pass
    # (no zeros buffer + scatter).
    xt = jnp.pad(x.T, ((0, 0), (0, n_pad - N)))

    kernel = functools.partial(_mlp_kernel, chunk=chunk)
    out = pl.pallas_call(
        kernel,
        out_shape=jax.ShapeDtypeStruct((1, n_pad), x.dtype),
        grid_spec=pltpu.PrefetchScalarGridSpec(
            num_scalar_prefetch=0,
            grid=(n_pad // tn,),
            in_specs=[
                pl.BlockSpec((D, tn), lambda i: (0, i)),    # x tile (pipelined)
                pl.BlockSpec((H, D), lambda i: (0, 0)),     # fc.weight (resident)
                pl.BlockSpec((H, 1), lambda i: (0, 0)),     # fc.bias   (resident)
                pl.BlockSpec((H, 1), lambda i: (0, 0)),     # fc2.weight (resident)
                pl.BlockSpec(memory_space=pltpu.MemorySpace.SMEM),  # fc2.bias scalar
            ],
            out_specs=pl.BlockSpec((1, tn), lambda i: (0, i)),
        ),
        compiler_params=pltpu.CompilerParams(
            # Row tiles are independent; harmless no-op on 1-TC chips.
            # TODO(synk): use pltpu.CORE_PARALLEL on v7x if only one TC engages.
            dimension_semantics=("parallel",),
        ),
    )(xt, w1, b1, w2, b2)

    # TODO(synk): dropout p>0, pooling ('average'/'max'/'concat_avg') and clamp
    # branches of NNModel are not implemented (identity / not taken for the
    # module defaults).
    return out[0, :N].reshape(N, 1)


if __name__ == "__main__":
    key = jax.random.PRNGKey(0)
    k_x, k_w1, k_b1, k_w2, k_b2 = jax.random.split(key, 5)

    # Module defaults: D=2, hidden_layer=64.  N is a non-multiple of the chunk
    # to exercise padding.
    N, D, H = 1000, 2, 64

    x = jax.random.normal(k_x, (N, D), dtype=jnp.float32)
    # Deterministic synthetic parameters in PyTorch-native layouts.
    w1 = jax.random.normal(k_w1, (H, D), dtype=jnp.float32) * 0.5   # fc.weight
    b1 = jax.random.normal(k_b1, (H, 1), dtype=jnp.float32) * 0.1   # fc.bias[:,None]
    w2 = jax.random.normal(k_w2, (H, 1), dtype=jnp.float32) * 0.5   # fc2.weight.T
    b2 = jax.random.normal(k_b2, (1, 1), dtype=jnp.float32) * 0.1   # fc2.bias[None,:]

    # Pure-JAX reference of the PyTorch forward.
    ref = jnp.maximum(x @ w1.T + b1.T, 0.0) @ w2 + b2

    # Default path: large (auto-clamped) tile, chunked inner loop.
    out = nn_model_forward(x, w1, b1, w2, b2)
    jax.block_until_ready(out)
    assert out.shape == (N, 1)
    assert jnp.allclose(out, ref, atol=1e-4, rtol=1e-4), float(
        jnp.max(jnp.abs(out - ref)))

    # Small-tile path to exercise multiple grid steps + tail padding.
    out2 = nn_model_forward(x, w1, b1, w2, b2, tn=512, chunk=128)
    jax.block_until_ready(out2)
    assert jnp.allclose(out2, ref, atol=1e-4, rtol=1e-4), float(
        jnp.max(jnp.abs(out2 - ref)))

    print("KERNEL_OK")
</pallas_src>

<mosaic_0001>
module attributes {stable_mosaic.version = 11 : i64} {
  func.func @_mlp_kernel(%arg0: i32, %arg1: memref<2x1024xf32, #tpu.memory_space<vmem>>, %arg2: memref<64x2xf32, #tpu.memory_space<vmem>>, %arg3: memref<64x1xf32, #tpu.memory_space<vmem>>, %arg4: memref<64x1xf32, #tpu.memory_space<vmem>>, %arg5: memref<1x1xf32, #tpu.memory_space<smem>>, %arg6: memref<1x1024xf32, #tpu.memory_space<vmem>>) attributes {dimension_semantics = [#tpu.dimension_semantics<parallel>], iteration_bounds = array<i64: 1>, scalar_prefetch = 0 : i64, scratch_operands = 0 : i64, tpu.core_type = #tpu.core_type<tc>, window_params = [{transform_indices = @transform_0, window_bounds = array<i64: 2, 1024>}, {pipeline_mode = #tpu.pipeline_mode<synchronous>, transform_indices = @transform_1, window_bounds = array<i64: 64, 2>}, {pipeline_mode = #tpu.pipeline_mode<synchronous>, transform_indices = @transform_2, window_bounds = array<i64: 64, 1>}, {pipeline_mode = #tpu.pipeline_mode<synchronous>, transform_indices = @transform_3, window_bounds = array<i64: 64, 1>}, {transform_indices = @transform_4, window_bounds = array<i64: 1, 1>}, {transform_indices = @transform_5, window_bounds = array<i64: 1, 1024>}]} {
    %c0 = arith.constant 0 : index
    %c0_0 = arith.constant 0 : index
    %0 = vector.load %arg2[%c0, %c0_0] : memref<64x2xf32, #tpu.memory_space<vmem>>, vector<64x1xf32>
    %1 = vector.shape_cast %0 : vector<64x1xf32> to vector<64x1xf32>
    %2 = vector.broadcast %1 : vector<64x1xf32> to vector<64x256xf32>
    %c0_1 = arith.constant 0 : index
    %c1 = arith.constant 1 : index
    %3 = vector.load %arg2[%c0_1, %c1] : memref<64x2xf32, #tpu.memory_space<vmem>>, vector<64x1xf32>
    %4 = vector.shape_cast %3 : vector<64x1xf32> to vector<64x1xf32>
    %5 = vector.broadcast %4 : vector<64x1xf32> to vector<64x256xf32>
    %c0_2 = arith.constant 0 : index
    %c0_3 = arith.constant 0 : index
    %6 = vector.load %arg3[%c0_2, %c0_3] : memref<64x1xf32, #tpu.memory_space<vmem>>, vector<64x1xf32>
    %7 = vector.shape_cast %6 : vector<64x1xf32> to vector<64x1xf32>
    %8 = vector.broadcast %7 : vector<64x1xf32> to vector<64x256xf32>
    %c0_4 = arith.constant 0 : index
    %c0_5 = arith.constant 0 : index
    %9 = vector.load %arg4[%c0_4, %c0_5] : memref<64x1xf32, #tpu.memory_space<vmem>>, vector<64x1xf32>
    %10 = vector.shape_cast %9 : vector<64x1xf32> to vector<64x1xf32>
    %11 = vector.broadcast %10 : vector<64x1xf32> to vector<64x256xf32>
    %c0_6 = arith.constant 0 : index
    %c0_7 = arith.constant 0 : index
    %12 = memref.load %arg5[%c0_6, %c0_7] : memref<1x1xf32, #tpu.memory_space<smem>>
    %c0_i32 = arith.constant 0 : i32
    %c256_i32 = arith.constant 256 : i32
    %13 = arith.muli %c0_i32, %c256_i32 : i32
    %14 = tpu.assume_multiple %13, 128 : i32
    %c0_8 = arith.constant 0 : index
    %15 = arith.index_cast %14 : i32 to index
    %16 = vector.load %arg1[%c0_8, %15] : memref<2x1024xf32, #tpu.memory_space<vmem>>, vector<2x256xf32>
    %17 = vector.extract_strided_slice %16 {offsets = [0, 0], sizes = [1, 256], strides = [1, 1]} : vector<2x256xf32> to vector<1x256xf32>
    %18 = vector.broadcast %17 : vector<1x256xf32> to vector<64x256xf32>
    %19 = arith.mulf %2, %18 : vector<64x256xf32>
    %20 = vector.extract_strided_slice %16 {offsets = [1, 0], sizes = [1, 256], strides = [1, 1]} : vector<2x256xf32> to vector<1x256xf32>
    %21 = vector.broadcast %20 : vector<1x256xf32> to vector<64x256xf32>
    %22 = arith.mulf %5, %21 : vector<64x256xf32>
    %23 = arith.addf %19, %22 : vector<64x256xf32>
    %24 = arith.addf %23, %8 : vector<64x256xf32>
    %cst = arith.constant 0.000000e+00 : f32
    %25 = vector.broadcast %cst : f32 to vector<64x256xf32>
    %26 = arith.maximumf %24, %25 : vector<64x256xf32>
    %27 = arith.mulf %26, %11 : vector<64x256xf32>
    %cst_9 = arith.constant dense<0.000000e+00> : vector<256xf32>
    %28 = vector.multi_reduction <add>, %27, %cst_9 [0] : vector<64x256xf32> to vector<256xf32>
    %29 = vector.shape_cast %28 : vector<256xf32> to vector<1x256xf32>
    %30 = vector.broadcast %12 : f32 to vector<1x256xf32>
    %31 = arith.addf %29, %30 : vector<1x256xf32>
    %c0_10 = arith.constant 0 : index
    %32 = arith.index_cast %14 : i32 to index
    %33 = vector.load %arg6[%c0_10, %32] : memref<1x1024xf32, #tpu.memory_space<vmem>>, vector<1x256xf32>
    tpu.vector_store %arg6[%c0_10, %32], %31 {strides = array<i32>} : memref<1x1024xf32, #tpu.memory_space<vmem>>, vector<1x256xf32>,
    %c1_i32 = arith.constant 1 : i32
    %c256_i32_11 = arith.constant 256 : i32
    %34 = arith.muli %c1_i32, %c256_i32_11 : i32
    %35 = tpu.assume_multiple %34, 128 : i32
    %c0_12 = arith.constant 0 : index
    %36 = arith.index_cast %35 : i32 to index
    %37 = vector.load %arg1[%c0_12, %36] : memref<2x1024xf32, #tpu.memory_space<vmem>>, vector<2x256xf32>
    %38 = vector.extract_strided_slice %37 {offsets = [0, 0], sizes = [1, 256], strides = [1, 1]} : vector<2x256xf32> to vector<1x256xf32>
    %39 = vector.broadcast %38 : vector<1x256xf32> to vector<64x256xf32>
    %40 = arith.mulf %2, %39 : vector<64x256xf32>
    %41 = vector.extract_strided_slice %37 {offsets = [1, 0], sizes = [1, 256], strides = [1, 1]} : vector<2x256xf32> to vector<1x256xf32>
    %42 = vector.broadcast %41 : vector<1x256xf32> to vector<64x256xf32>
    %43 = arith.mulf %5, %42 : vector<64x256xf32>
    %44 = arith.addf %40, %43 : vector<64x256xf32>
    %45 = arith.addf %44, %8 : vector<64x256xf32>
    %cst_13 = arith.constant 0.000000e+00 : f32
    %46 = vector.broadcast %cst_13 : f32 to vector<64x256xf32>
    %47 = arith.maximumf %45, %46 : vector<64x256xf32>
    %48 = arith.mulf %47, %11 : vector<64x256xf32>
    %cst_14 = arith.constant dense<0.000000e+00> : vector<256xf32>
    %49 = vector.multi_reduction <add>, %48, %cst_14 [0] : vector<64x256xf32> to vector<256xf32>
    %50 = vector.shape_cast %49 : vector<256xf32> to vector<1x256xf32>
    %51 = vector.broadcast %12 : f32 to vector<1x256xf32>
    %52 = arith.addf %50, %51 : vector<1x256xf32>
    %c0_15 = arith.constant 0 : index
    %53 = arith.index_cast %35 : i32 to index
    %54 = vector.load %arg6[%c0_15, %53] : memref<1x1024xf32, #tpu.memory_space<vmem>>, vector<1x256xf32>
    tpu.vector_store %arg6[%c0_15, %53], %52 {strides = array<i32>} : memref<1x1024xf32, #tpu.memory_space<vmem>>, vector<1x256xf32>,
    %c2_i32 = arith.constant 2 : i32
    %c256_i32_16 = arith.constant 256 : i32
    %55 = arith.muli %c2_i32, %c256_i32_16 : i32
    %56 = tpu.assume_multiple %55, 128 : i32
    %c0_17 = arith.constant 0 : index
    %57 = arith.index_cast %56 : i32 to index
    %58 = vector.load %arg1[%c0_17, %57] : memref<2x1024xf32, #tpu.memory_space<vmem>>, vector<2x256xf32>
    %59 = vector.extract_strided_slice %58 {offsets = [0, 0], sizes = [1, 256], strides = [1, 1]} : vector<2x256xf32> to vector<1x256xf32>
    %60 = vector.broadcast %59 : vector<1x256xf32> to vector<64x256xf32>
    %61 = arith.mulf %2, %60 : vector<64x256xf32>
    %62 = vector.extract_strided_slice %58 {offsets = [1, 0], sizes = [1, 256], strides = [1, 1]} : vector<2x256xf32> to vector<1x256xf32>
    %63 = vector.broadcast %62 : vector<1x256xf32> to vector<64x256xf32>
    %64 = arith.mulf %5, %63 : vector<64x256xf32>
    %65 = arith.addf %61, %64 : vector<64x256xf32>
    %66 = arith.addf %65, %8 : vector<64x256xf32>
    %cst_18 = arith.constant 0.000000e+00 : f32
    %67 = vector.broadcast %cst_18 : f32 to vector<64x256xf32>
    %68 = arith.maximumf %66, %67 : vector<64x256xf32>
    %69 = arith.mulf %68, %11 : vector<64x256xf32>
    %cst_19 = arith.constant dense<0.000000e+00> : vector<256xf32>
    %70 = vector.multi_reduction <add>, %69, %cst_19 [0] : vector<64x256xf32> to vector<256xf32>
    %71 = vector.shape_cast %70 : vector<256xf32> to vector<1x256xf32>
    %72 = vector.broadcast %12 : f32 to vector<1x256xf32>
    %73 = arith.addf %71, %72 : vector<1x256xf32>
    %c0_20 = arith.constant 0 : index
    %74 = arith.index_cast %56 : i32 to index
    %75 = vector.load %arg6[%c0_20, %74] : memref<1x1024xf32, #tpu.memory_space<vmem>>, vector<1x256xf32>
    tpu.vector_store %arg6[%c0_20, %74], %73 {strides = array<i32>} : memref<1x1024xf32, #tpu.memory_space<vmem>>, vector<1x256xf32>,
    %c3_i32 = arith.constant 3 : i32
    %c256_i32_21 = arith.constant 256 : i32
    %76 = arith.muli %c3_i32, %c256_i32_21 : i32
    %77 = tpu.assume_multiple %76, 128 : i32
    %c0_22 = arith.constant 0 : index
    %78 = arith.index_cast %77 : i32 to index
    %79 = vector.load %arg1[%c0_22, %78] : memref<2x1024xf32, #tpu.memory_space<vmem>>, vector<2x256xf32>
    %80 = vector.extract_strided_slice %79 {offsets = [0, 0], sizes = [1, 256], strides = [1, 1]} : vector<2x256xf32> to vector<1x256xf32>
    %81 = vector.broadcast %80 : vector<1x256xf32> to vector<64x256xf32>
    %82 = arith.mulf %2, %81 : vector<64x256xf32>
    %83 = vector.extract_strided_slice %79 {offsets = [1, 0], sizes = [1, 256], strides = [1, 1]} : vector<2x256xf32> to vector<1x256xf32>
    %84 = vector.broadcast %83 : vector<1x256xf32> to vector<64x256xf32>
    %85 = arith.mulf %5, %84 : vector<64x256xf32>
    %86 = arith.addf %82, %85 : vector<64x256xf32>
    %87 = arith.addf %86, %8 : vector<64x256xf32>
    %cst_23 = arith.constant 0.000000e+00 : f32
    %88 = vector.broadcast %cst_23 : f32 to vector<64x256xf32>
    %89 = arith.maximumf %87, %88 : vector<64x256xf32>
    %90 = arith.mulf %89, %11 : vector<64x256xf32>
    %cst_24 = arith.constant dense<0.000000e+00> : vector<256xf32>
    %91 = vector.multi_reduction <add>, %90, %cst_24 [0] : vector<64x256xf32> to vector<256xf32>
    %92 = vector.shape_cast %91 : vector<256xf32> to vector<1x256xf32>
    %93 = vector.broadcast %12 : f32 to vector<1x256xf32>
    %94 = arith.addf %92, %93 : vector<1x256xf32>
    %c0_25 = arith.constant 0 : index
    %95 = arith.index_cast %77 : i32 to index
    %96 = vector.load %arg6[%c0_25, %95] : memref<1x1024xf32, #tpu.memory_space<vmem>>, vector<1x256xf32>
    tpu.vector_store %arg6[%c0_25, %95], %94 {strides = array<i32>} : memref<1x1024xf32, #tpu.memory_space<vmem>>, vector<1x256xf32>,
    %c4_i32 = arith.constant 4 : i32
    return
  }
  func.func @transform_0(%arg0: i32) -> (i32, i32) {
    %c0_i32 = arith.constant 0 : i32
    %c0_i32_0 = arith.constant 0 : i32
    return %c0_i32, %arg0 : i32, i32
  }
  func.func @transform_1(%arg0: i32) -> (i32, i32) {
    %c0_i32 = arith.constant 0 : i32
    %c0_i32_0 = arith.constant 0 : i32
    %c0_i32_1 = arith.constant 0 : i32
    return %c0_i32, %c0_i32_0 : i32, i32
  }
  func.func @transform_2(%arg0: i32) -> (i32, i32) {
    %c0_i32 = arith.constant 0 : i32
    %c0_i32_0 = arith.constant 0 : i32
    %c0_i32_1 = arith.constant 0 : i32
    return %c0_i32, %c0_i32_0 : i32, i32
  }
  func.func @transform_3(%arg0: i32) -> (i32, i32) {
    %c0_i32 = arith.constant 0 : i32
    %c0_i32_0 = arith.constant 0 : i32
    %c0_i32_1 = arith.constant 0 : i32
    return %c0_i32, %c0_i32_0 : i32, i32
  }
  func.func @transform_4(%arg0: i32) -> (i32, i32) {
    %c0_i32 = arith.constant 0 : i32
    %c0_i32_0 = arith.constant 0 : i32
    %c0_i32_1 = arith.constant 0 : i32
    return %c0_i32, %c0_i32_0 : i32, i32
  }
  func.func @transform_5(%arg0: i32) -> (i32, i32) {
    %c0_i32 = arith.constant 0 : i32
    %c0_i32_0 = arith.constant 0 : i32
    return %c0_i32, %arg0 : i32, i32
  }
}

</mosaic_0001>

<bundles_post_ra>
// kernel: tpu_custom_call.1
= control target key start
LH: loop header
LB: loop body
LE: loop exit
PB: predicated region body
PF: predicated region fallthrough
CT: control target
= control target key end

     0   :  { %v988_v2 = vmov 1   ;;  %v989_v3 = vmov 0   ;;  %s1909_s0 = inlined_call_operand.vmem [shape: f32[2,1024], index: 0, kind: input, shape index: {}]   ;;  %s1910_s1 = inlined_call_operand.vmem [shape: f32[64,2], index: 1, kind: input, shape index: {}]   ;;  %s1911_s2 = inlined_call_operand.vmem [shape: f32[64,1], index: 2, kind: input, shape index: {}]   ;;  %s1912_s3 = inlined_call_operand.vmem [shape: f32[64,1], index: 3, kind: input, shape index: {}]   ;;  %s1913_s4 = inlined_call_operand.<no memory space> [shape: f32[1,1], index: 4, kind: input, shape index: {}]   ;;  %s1914_s5 = inlined_call_operand.hbm [shape: f32[1,1024], index: 5, kind: output, shape index: {}]  }
   0x1   :  { %v24_v0 = vld [vmem:[%s1910_s1 + $0x10] sm:$0xff]  ;;  %v23_v1 = vld [vmem:[%s1910_s1 + $0x8] sm:$0xff]  ;;  %957 = vset.pattern.permute.xlu0 %v988_v2  ;;  %955 = vset.pattern.permute.xlu1 %v989_v3  ;;  %v25_v4 = vld [vmem:[%s1910_s1 + $0x18] sm:$0xff] }
   0x2   :  { %42 = vperm.xlu1 %955, %v24_v0   ;;  %75 = vperm.xlu0 %957, %v23_v1   ;;  %v27_v5 = vld [vmem:[%s1910_s1 + $0x28] sm:$0xff]  ;;  %v22_v6 = vld [vmem:[%s1910_s1] sm:$0xff] }
   0x6   :  { %47 = vperm.xlu1 %955, %v25_v4   ;;  %91 = vperm.xlu0 %957, %v27_v5  }
   0x7   :  { %11 = vsyncpa [#allocation4], 0  ;;  %v26_v7 = vld [vmem:[%s1910_s1 + $0x20] sm:$0xff]  ;;  %v103_v9 = vld [vmem:[%s1911_s2 + $0x8] sm:$0xff]  ;;  %v1915_v26 = vlaneseq  ;;  %v990_v38 = vmov 1966171168  }
   0x8   :  { %v102_v8 = vld [vmem:[%s1911_s2] sm:$0xff]  ;;  %v104_v10 = vld [vmem:[%s1911_s2 + $0x10] sm:$0xff]  ;;  %v151_v11 = vld [vmem:[%s1912_s3 + $0x8] sm:$0xff]  ;;  %v366_v39 = vunpack.c.l.s4 %v990_v38 }
   0x9   :  { %v106_v12 = vld [vmem:[%s1911_s2 + $0x20] sm:$0xff]  ;;  %v105_v13 = vld [vmem:[%s1911_s2 + $0x18] sm:$0xff]  ;;  %v107_v16 = vld [vmem:[%s1911_s2 + $0x28] sm:$0xff]  ;;  %v202_v27 = vshrl.u32 %v1915_v26, 7 }
   0xa   :  { %956 = vset.pattern.permute.xlu1 %v988_v2  ;;  %961 = vset.pattern.permute.xlu0 %v989_v3  ;;  %v29_v14 = vld [vmem:[%s1910_s1 + $0x38] sm:$0xff]  ;;  %v150_v15 = vld [vmem:[%s1912_s3] sm:$0xff]  ;;  %v28_v17 = vld [vmem:[%s1910_s1 + $0x30] sm:$0xff]  ;;  %v367_v56 = vunpack.c.0.s8 %v366_v39 }
   0xb   :  { %32 = vperm.xlu0 %961, %v22_v6   ;;  %71 = vperm.xlu1 %956, %v22_v6   ;;  %v108_v18 = vld [vmem:[%s1911_s2 + $0x30] sm:$0xff]  ;;  %v109_v19 = vld [vmem:[%s1911_s2 + $0x38] sm:$0xff]  ;;  %v154_v23 = vld [vmem:[%s1912_s3 + $0x20] sm:$0xff]  ;;  %v203_v28 = vsub.s32 0, %v202_v27  ;;  %v207_v30 = vsub.s32 2, %v202_v27  ;;  %v237_v31 = vsub.s32 1, %v202_v27 }
   0xc   :  { %v156_v20 = vld [vmem:[%s1912_s3 + $0x30] sm:$0xff]  ;;  %v153_v22 = vld [vmem:[%s1912_s3 + $0x18] sm:$0xff]  ;;  %v155_v24 = vld [vmem:[%s1912_s3 + $0x28] sm:$0xff]  ;;  %v241_v32 = vsub.s32 3, %v202_v27 }
   0xd   :  { %v152_v21 = vld [vmem:[%s1912_s3 + $0x10] sm:$0xff]  ;;  %v157_v25 = vld [vmem:[%s1912_s3 + $0x38] sm:$0xff]  ;;  %v199_v29 = vld [vmem:[%s1909_s0] sm:$0xf] }
   0xe   :  { %v204_v33 = vrot.slane %v199_v29, %v203_v28  ;;  %v948_v34 = vld [vmem:[%s1909_s0 + $0x4] sm:$0xf]  ;;  %v949_v35 = vld [vmem:[%s1909_s0 + $0x8] sm:$0xf]  ;;  %v208_v36 = vrot.slane %v199_v29, %v207_v30  ;;  %v238_v37 = vrot.slane %v199_v29, %v237_v31  ;;  %v950_v40 = vld [vmem:[%s1909_s0 + $0xc] sm:$0xf]  ;;  %v242_v41 = vrot.slane %v199_v29, %v241_v32 }
   0xf   :  { %37 = vperm.xlu0 %961, %v23_v1   ;;  %79 = vperm.xlu1 %956, %v24_v0   ;;  %v391_v42 = vrot.slane %v948_v34, %v203_v28  ;;  %v395_v43 = vrot.slane %v948_v34, %v207_v30  ;;  %v425_v44 = vrot.slane %v948_v34, %v237_v31 }
  0x10   :  { %v1107_v45 = vrot.slane %v204_v33, %v203_v28  ;;  %v429_v46 = vrot.slane %v948_v34, %v241_v32  ;;  %v574_v47 = vrot.slane %v949_v35, %v203_v28  ;;  %v578_v48 = vrot.slane %v949_v35, %v207_v30 }
  0x11   :  { %v608_v51 = vrot.slane %v949_v35, %v237_v31  ;;  %v612_v52 = vrot.slane %v949_v35, %v241_v32  ;;  %v757_v53 = vrot.slane %v950_v40, %v203_v28  ;;  %v761_v54 = vrot.slane %v950_v40, %v207_v30 }
  0x12   :  { %v1113_v55 = vrot.slane %v208_v36, %v203_v28  ;;  %v791_v57 = vrot.slane %v950_v40, %v237_v31  ;;  %v795_v58 = vrot.slane %v950_v40, %v241_v32  ;;  %v1115_v59 = vrot.slane %v238_v37, %v237_v31 }
  0x13   :  { %52 = vperm.xlu0 %961, %v26_v7   ;;  %83 = vperm.xlu1 %956, %v25_v4   ;;  %v1117_v60 = vrot.slane %v242_v41, %v237_v31  ;;  %v1119_v61 = vrot.slane %v391_v42, %v203_v28  ;;  %v1121_v62 = vrot.slane %v395_v43, %v203_v28 }
  0x14   :  { %v1123_v63 = vrot.slane %v425_v44, %v237_v31  ;;  %v1125_v0 = vrot.slane %v429_v46, %v237_v31  ;;  %v1127_v1 = vrot.slane %v574_v47, %v203_v28  ;;  %v1137_v6 = vrot.slane %v612_v52, %v237_v31 }
  0x15   :  { %1982 = vst [vmem:[#allocation8_spill] sm:$0xff] %v1117_v60 }
  0x16   :  { %1983 = vst [vmem:[#allocation9_spill] sm:$0xff] %v1123_v63  ;;  %1984 = vst [vmem:[#allocation10_spill] sm:$0xff] %v1125_v0 }
  0x17   :  { %112 = vperm.xlu0 %961, %v102_v8   ;;  %958 = vset.pattern.permute.xlu1 %v989_v3  ;;  %v1141_v8 = vrot.slane %v761_v54, %v203_v28 }
  0x18   :  { %117 = vperm.xlu1 %958, %v103_v9   ;;  %v1146_v9 = vstv %s1913_s4  ;;  %s991_s4 = smov [#allocation3]  }
  0x19   :  { %1988 = vst [vmem:[#allocation14_spill] sm:$0xff] %v1141_v8  ;;  %1989 = vst [vmem:[#allocation15_spill] sm:$0xff] %v1146_v9  ;;  %s940_s22 = sshll.u32 %s991_s4, 4  ;;  %s941_s22 = int_to_ptr.vmem [resolvable:$true] %s940_s22 }
  0x1a   :  { %s966_s23 = scalar_lea.vmem %s941_s22, 128  ;;  %p971_p1 = scmp.lt.s32.totalorder %s941_s22, %s941_s22 }
  0x1b   :  { %122 = vperm.xlu0 %961, %v104_v10   ;;  %v1148_v10 = vsub.s32 %v367_v56, %v202_v27  ;;  %p967_p0 = scmp.ne.s32.totalorder %s941_s22, %s966_s23  ;;  %p972_p2 = scmp.lt.s32.totalorder %s966_s23, %s966_s23 }
  0x1c   :  { %959 = vset.pattern.permute.xlu1 %v988_v2 }
  0x1d   :  { %87 = vperm.xlu1 %959, %v26_v7   ;;  %v1139_v7 = vrot.slane %v757_v53, %v203_v28  ;;  %1990 = vst [vmem:[#allocation16_spill] sm:$0xff] %v1148_v10  ;;  %p973_p3 = por %p972_p2, %p971_p1 }
  0x1f   :  { %165 = vperm.xlu0 %961, %v151_v11   ;;  %1987 = vst [vmem:[#allocation13_spill] sm:$0xff] %v1139_v7  ;;  %v1150_v11 = vrot.slane %v791_v57, %v237_v31  ;;  %p974_p4 = pnand %p973_p3, %p967_p0 }
  0x21   :  { %960 = vset.pattern.permute.xlu1 %v989_v3  ;;  %1991 = vst [vmem:[#allocation17_spill] sm:$0xff] %v1150_v11 }
  0x22   :  { %57 = vperm.xlu1 %960, %v27_v5   ;;  %v1135_v5 = vrot.slane %v608_v51, %v237_v31 }
  0x23   :  { %132 = vperm.xlu0 %961, %v106_v12   ;;  %v1152_v12 = vrot.slane %v795_v58, %v237_v31 }
  0x25   :  { %1992 = vst [vmem:[#allocation18_spill] sm:$0xff] %v1152_v12 }
  0x26   :  { %127 = vperm.xlu1 %960, %v105_v13  }
  0x27   :  { %67 = vperm.xlu0 %961, %v29_v14  }
  0x2a   :  { %160 = vperm.xlu1 %960, %v150_v15  }
  0x2b   :  { %137 = vperm.xlu0 %961, %v107_v16  }
  0x2e   :  { %62 = vperm.xlu1 %960, %v28_v17  }
  0x2f   :  { %142 = vperm.xlu0 %961, %v108_v18  }
  0x32   :  { %962 = vset.pattern.permute.xlu1 %v988_v2 }
  0x33   :  { %147 = vperm.xlu0 %961, %v109_v19   ;;  %95 = vperm.xlu1 %962, %v28_v17  }
  0x37   :  { %190 = vperm.xlu0 %961, %v156_v20   ;;  %963 = vset.pattern.permute.xlu1 %v989_v3 }
  0x38   :  { %170 = vperm.xlu1 %963, %v152_v21  }
  0x3c   :  { %964 = vset.pattern.permute.xlu1 %v988_v2  ;;  %v1129_v2 = vrot.slane %v578_v48, %v203_v28 }
  0x3d   :  { %99 = vperm.xlu1 %964, %v29_v14  }
  0x41   :  { %965 = vset.pattern.permute.xlu1 %v989_v3 }
  0x42   :  { %175 = vperm.xlu1 %965, %v153_v22  }
  0x46   :  { %180 = vperm.xlu1 %965, %v154_v23  }
  0x4a   :  { %185 = vperm.xlu1 %965, %v155_v24  }
  0x4e   :  { %195 = vperm.xlu1 %965, %v157_v25  }
  0x7d   :  { %v1109_v49 = vpop.permute.xlu1 %42  ;;  %v1111_v50 = vpop.permute.xlu0 %75 }
  0x7e   :  { %1980 = vst [vmem:[#allocation6_spill] sm:$0xff] %v1109_v49  ;;  %1981 = vst [vmem:[#allocation7_spill] sm:$0xff] %v1111_v50  ;;  %v223_v13 = vmul.f32 %v1107_v45, %v1109_v49  ;;  %v224_v14 = vmul.f32 %v1113_v55, %v1109_v49  ;;  %v255_v15 = vmul.f32 %v1115_v59, %v1111_v50 }
  0x7f   :  { %v256_v16 = vmul.f32 %v1117_v60, %v1111_v50  ;;  %v410_v17 = vmul.f32 %v1119_v61, %v1109_v49  ;;  %v411_v18 = vmul.f32 %v1121_v62, %v1109_v49  ;;  %v442_v19 = vmul.f32 %v1123_v63, %v1111_v50 }
  0x80   :  { %v443_v20 = vmul.f32 %v1125_v0, %v1111_v50  ;;  %v1172_v21 = vmul.f32 %v1127_v1, %v1109_v49  ;;  %v1176_v22 = vmul.f32 %v1129_v2, %v1109_v49  ;;  %v1180_v23 = vmul.f32 %v1135_v5, %v1111_v50 }
  0x81   :  { %v1131_v3 = vpop.permute.xlu1 %47  ;;  %v1133_v4 = vpop.permute.xlu0 %91  ;;  %v1184_v24 = vmul.f32 %v1137_v6, %v1111_v50 }
  0x82   :  { %1985 = vst [vmem:[#allocation11_spill] sm:$0xff] %v1131_v3  ;;  %1986 = vst [vmem:[#allocation12_spill] sm:$0xff] %v1133_v4  ;;  %v225_v28 = vmul.f32 %v1107_v45, %v1131_v3  ;;  %v226_v29 = vmul.f32 %v1113_v55, %v1131_v3  ;;  %v1196_v30 = vmul.f32 %v1115_v59, %v1133_v4 }
  0x83   :  { %v1200_v31 = vmul.f32 %v1117_v60, %v1133_v4  ;;  %v1204_v32 = vmul.f32 %v1119_v61, %v1131_v3  ;;  %v1208_v33 = vmul.f32 %v1121_v62, %v1131_v3  ;;  %v1212_v34 = vmul.f32 %v1123_v63, %v1133_v4 }
  0x84   :  { %v1216_v35 = vmul.f32 %v1125_v0, %v1133_v4  ;;  %v1228_v40 = vmul.f32 %v1127_v1, %v1131_v3  ;;  %v1232_v41 = vmul.f32 %v1129_v2, %v1131_v3  ;;  %v1236_v42 = vmul.f32 %v1135_v5, %v1133_v4 }
  0x85   :  { %v1240_v43 = vmul.f32 %v1137_v6, %v1133_v4 }
  0x86   :  { %v1186_v25 = vpop.permute.xlu0 %32  ;;  %v1188_v27 = vpop.permute.xlu1 %71  ;;  %1995 = vst [vmem:[#allocation21_spill] sm:$0xff] %v1228_v40  ;;  %1996 = vst [vmem:[#allocation22_spill] sm:$0xff] %v1232_v41 }
  0x87   :  { %1993 = vst [vmem:[#allocation19_spill] sm:$0xff] %v1186_v25  ;;  %1994 = vst [vmem:[#allocation20_spill] sm:$0xff] %v1188_v27  ;;  %v219_v36 = vmul.f32 %v1107_v45, %v1186_v25  ;;  %v220_v37 = vmul.f32 %v1113_v55, %v1186_v25  ;;  %v253_v38 = vmul.f32 %v1115_v59, %v1188_v27 }
  0x88   :  { %v254_v39 = vmul.f32 %v1117_v60, %v1188_v27  ;;  %1997 = vst [vmem:[#allocation23_spill] sm:$0xff] %v1236_v42  ;;  %1998 = vst [vmem:[#allocation24_spill] sm:$0xff] %v1240_v43  ;;  %v406_v47 = vmul.f32 %v1119_v61, %v1186_v25  ;;  %v407_v48 = vmul.f32 %v1121_v62, %v1186_v25 }
  0x89   :  { %v440_v51 = vmul.f32 %v1123_v63, %v1188_v27  ;;  %v441_v52 = vmul.f32 %v1125_v0, %v1188_v27  ;;  %v269_v58 = vadd.f32 %v253_v38, %v219_v36  ;;  %v1272_v50 = vmul.f32 %v1127_v1, %v1186_v25 }
  0x8a   :  { %v1242_v44 = vpop.permute.xlu0 %37  ;;  %v1244_v46 = vpop.permute.xlu1 %79  ;;  %v270_v26 = vadd.f32 %v254_v39, %v220_v37  ;;  %v1276_v36 = vmul.f32 %v1129_v2, %v1186_v25  ;;  %v1284_v8 = vmul.f32 %v1135_v5, %v1188_v27  ;;  %v1288_v7 = vmul.f32 %v1137_v6, %v1188_v27 }
  0x8b   :  { %1999 = vst [vmem:[#allocation25_spill] sm:$0xff] %v1242_v44  ;;  %2000 = vst [vmem:[#allocation26_spill] sm:$0xff] %v1244_v46  ;;  %v221_v53 = vmul.f32 %v1107_v45, %v1242_v44  ;;  %v222_v54 = vmul.f32 %v1113_v55, %v1242_v44  ;;  %v257_v56 = vmul.f32 %v1115_v59, %v1244_v46 }
  0x8c   :  { %v258_v57 = vmul.f32 %v1117_v60, %v1244_v46  ;;  %v408_v4 = vmul.f32 %v1119_v61, %v1242_v44  ;;  %v409_v10 = vmul.f32 %v1121_v62, %v1242_v44  ;;  %v444_v12 = vmul.f32 %v1123_v63, %v1244_v46 }
  0x8d   :  { %v445_v11 = vmul.f32 %v1125_v0, %v1244_v46  ;;  %v456_v39 = vadd.f32 %v440_v51, %v406_v47  ;;  %v457_v3 = vadd.f32 %v441_v52, %v407_v48  ;;  %v271_v49 = vadd.f32 %v255_v15, %v221_v53 }
  0x8e   :  { %v1278_v37 = vpop.permute.xlu0 %52  ;;  %v1280_v38 = vpop.permute.xlu1 %83  ;;  %v272_v9 = vadd.f32 %v256_v16, %v222_v54  ;;  %v273_v43 = vadd.f32 %v257_v56, %v223_v13  ;;  %v274_v42 = vadd.f32 %v258_v57, %v224_v14  ;;  %v458_v47 = vadd.f32 %v442_v19, %v408_v4 }
  0x8f   :  { %2001 = vst [vmem:[#allocation27_spill] sm:$0xff] %v1278_v37  ;;  %2002 = vst [vmem:[#allocation28_spill] sm:$0xff] %v1280_v38  ;;  %v259_v25 = vmul.f32 %v1115_v59, %v1280_v38  ;;  %v260_v41 = vmul.f32 %v1117_v60, %v1280_v38  ;;  %v459_v48 = vadd.f32 %v443_v20, %v409_v10 }
  0x90   :  { %v446_v51 = vmul.f32 %v1123_v63, %v1280_v38  ;;  %v447_v52 = vmul.f32 %v1125_v0, %v1280_v38  ;;  %v460_v27 = vadd.f32 %v444_v12, %v410_v17  ;;  %v461_v40 = vadd.f32 %v445_v11, %v411_v18 }
  0x91   :  { %v227_v13 = vmul.f32 %v1107_v45, %v1278_v37  ;;  %v228_v14 = vmul.f32 %v1113_v55, %v1278_v37  ;;  %v414_v4 = vmul.f32 %v1119_v61, %v1278_v37  ;;  %v415_v10 = vmul.f32 %v1121_v62, %v1278_v37 }
  0x92   :  { %v1298_v15 = vpop.permute.xlu0 %112  ;;  %v1322_v18 = vadd.f32 %v259_v25, %v225_v28  ;;  %v1324_v20 = vadd.f32 %v260_v41, %v226_v29  ;;  %v1328_v53 = vmul.f32 %v1127_v1, %v1242_v44  ;;  %v1332_v54 = vmul.f32 %v1129_v2, %v1242_v44 }
  0x93   :  { %2003 = vst [vmem:[#allocation29_spill] sm:$0xff] %v1298_v15  ;;  %v1308_v16 = vpop.permute.xlu1 %117  ;;  %v1311_v19 = vadd.f32 %v269_v58, %v1298_v15  ;;  %v1314_v11 = vadd.f32 %v270_v26, %v1298_v15  ;;  %v1317_v12 = vadd.f32 %v456_v39, %v1298_v15  ;;  %v1320_v17 = vadd.f32 %v457_v3, %v1298_v15 }
  0x94   :  { %2004 = vst [vmem:[#allocation30_spill] sm:$0xff] %v1308_v16  ;;  %v287_v26 = vadd.f32 %v271_v49, %v1308_v16  ;;  %v288_v56 = vadd.f32 %v272_v9, %v1308_v16  ;;  %v1337_v57 = vadd.f32 %v446_v51, %v1204_v32  ;;  %v1340_v3 = vadd.f32 %v447_v52, %v1208_v33 }
  0x95   :  { %v474_v28 = vadd.f32 %v458_v47, %v1308_v16  ;;  %v475_v29 = vadd.f32 %v459_v48, %v1308_v16  ;;  %v1348_v41 = vmul.f32 %v1127_v1, %v1278_v37  ;;  %v1352_v49 = vmul.f32 %v1129_v2, %v1278_v37 }
  0x96   :  { %v1342_v25 = vpop.permute.xlu0 %122  ;;  %v303_v33 = vmax.f32 %v287_v26, 0.0  ;;  %v304_v9 = vmax.f32 %v288_v56, 0.0  ;;  %v1392_v26 = vmul.f32 %v1135_v5, %v1280_v38  ;;  %v1396_v56 = vmul.f32 %v1137_v6, %v1280_v38 }
  0x97   :  { %2005 = vst [vmem:[#allocation31_spill] sm:$0xff] %v1342_v25  ;;  %2006 = vst [vmem:[#allocation32_spill] sm:$0xff] %v1348_v41  ;;  %v1361_v47 = vadd.f32 %v273_v43, %v1342_v25  ;;  %v1364_v48 = vadd.f32 %v274_v42, %v1342_v25  ;;  %v1367_v51 = vadd.f32 %v460_v27, %v1342_v25  ;;  %v490_v43 = vmax.f32 %v474_v28, 0.0 }
  0x98   :  { %2007 = vst [vmem:[#allocation33_spill] sm:$0xff] %v1352_v49  ;;  %v1358_v39 = vpop.permute.xlu1 %87  ;;  %v1370_v52 = vadd.f32 %v461_v40, %v1342_v25  ;;  %v491_v44 = vmax.f32 %v475_v29, 0.0  ;;  %v1384_v40 = vmul.f32 %v1135_v5, %v1244_v46  ;;  %v1388_v25 = vmul.f32 %v1137_v6, %v1244_v46 }
  0x99   :  { %2008 = vst [vmem:[#allocation34_spill] sm:$0xff] %v1358_v39  ;;  %v261_v32 = vmul.f32 %v1115_v59, %v1358_v39  ;;  %v262_v58 = vmul.f32 %v1117_v60, %v1358_v39  ;;  %v448_v42 = vmul.f32 %v1123_v63, %v1358_v39  ;;  %v449_v27 = vmul.f32 %v1125_v0, %v1358_v39 }
  0x9a   :  { %v1376_v37 = vpop.permute.xlu0 %165 }
  0x9b   :  { %2009 = vst [vmem:[#allocation35_spill] sm:$0xff] %v1376_v37  ;;  %v277_v46 = vadd.f32 %v261_v32, %v227_v13  ;;  %v278_v41 = vadd.f32 %v262_v58, %v228_v14  ;;  %v464_v0 = vadd.f32 %v448_v42, %v414_v4  ;;  %v465_v63 = vadd.f32 %v449_v27, %v415_v10 }
  0x9c   :  { %v319_v10 = vmul.f32 %v303_v33, %v1376_v37  ;;  %v320_v32 = vmul.f32 %v304_v9, %v1376_v37  ;;  %v506_v58 = vmul.f32 %v490_v43, %v1376_v37  ;;  %v507_v42 = vmul.f32 %v491_v44, %v1376_v37 }
  0x9d   :  { %v1402_v49 = vpop.permute.xlu1 %57 }
  0x9e   :  { %2010 = vst [vmem:[#allocation36_spill] sm:$0xff] %v1402_v49  ;;  %v1404_v60 = vpop.permute.xlu0 %132  ;;  %v229_v38 = vmul.f32 %v1107_v45, %v1402_v49  ;;  %v230_v16 = vmul.f32 %v1113_v55, %v1402_v49  ;;  %v416_v28 = vmul.f32 %v1119_v61, %v1402_v49  ;;  %v417_v15 = vmul.f32 %v1121_v62, %v1402_v49 }
  0x9f   :  { %2011 = vst [vmem:[#allocation37_spill] sm:$0xff] %v1404_v60  ;;  %v1415_v29 = vadd.f32 %v277_v46, %v1404_v60  ;;  %v1418_v13 = vadd.f32 %v278_v41, %v1404_v60  ;;  %v1421_v14 = vadd.f32 %v464_v0, %v1404_v60  ;;  %v1424_v4 = vadd.f32 %v465_v63, %v1404_v60 }
  0xa0   :  { %v1434_v46 = vmul.f32 %v1135_v5, %v1358_v39  ;;  %v1438_v0 = vmul.f32 %v1137_v6, %v1358_v39  ;;  %v1442_v63 = vadd.f32 %v1284_v8, %v1272_v50  ;;  %v1446_v41 = vadd.f32 %v1288_v7, %v1276_v36 }
  0xa1   :  { %2012 = vst [vmem:[#allocation38_spill] sm:$0xff] %v1415_v29  ;;  %2013 = vst [vmem:[#allocation39_spill] sm:$0xff] %v1418_v13  ;;  %v1430_v27 = vpop.permute.xlu1 %127  ;;  %v279_v44 = vadd.f32 %v1196_v30, %v229_v38  ;;  %v280_v33 = vadd.f32 %v1200_v31, %v230_v16  ;;  %v466_v43 = vadd.f32 %v1212_v34, %v416_v28  ;;  %v2020_v8 = vmax.f32 %v1317_v12, 0.0  ;;  %v2033_v13 = vld [vmem:[#allocation32_spill] sm:$0xff] }
  0xa2   :  { %2014 = vst [vmem:[#allocation40_spill] sm:$0xff] %v1421_v14  ;;  %2015 = vst [vmem:[#allocation41_spill] sm:$0xff] %v1424_v4  ;;  %v1448_v9 = vpop.permute.xlu0 %67  ;;  %v467_v37 = vadd.f32 %v1216_v35, %v417_v15  ;;  %v1460_v7 = vadd.f32 %v1322_v18, %v1430_v27  ;;  %v1464_v30 = vadd.f32 %v1324_v20, %v1430_v27  ;;  %v2018_v20 = vmax.f32 %v1311_v19, 0.0 }
  0xa3   :  { %2016 = vst [vmem:[#allocation42_spill] sm:$0xff] %v1448_v9  ;;  %v1468_v31 = vadd.f32 %v1337_v57, %v1430_v27  ;;  %v1472_v34 = vadd.f32 %v1340_v3, %v1430_v27  ;;  %v1478_v36 = vmul.f32 %v1107_v45, %v1448_v9  ;;  %v1482_v38 = vmul.f32 %v1113_v55, %v1448_v9 }
  0xa4   :  { %v1486_v15 = vmul.f32 %v1119_v61, %v1448_v9  ;;  %v1490_v16 = vmul.f32 %v1121_v62, %v1448_v9  ;;  %v2019_v3 = vmax.f32 %v1314_v11, 0.0  ;;  %v2021_v60 = vmax.f32 %v1320_v17, 0.0 }
  0xa5   :  { %v1474_v35 = vpop.permute.xlu1 %160 }
  0xa6   :  { %2017 = vst [vmem:[#allocation43_spill] sm:$0xff] %v1474_v35  ;;  %v1492_v18 = vpop.permute.xlu0 %137  ;;  %v317_v57 = vmul.f32 %v2018_v20, %v1474_v35  ;;  %v318_v28 = vmul.f32 %v2019_v3, %v1474_v35  ;;  %v504_v50 = vmul.f32 %v2020_v8, %v1474_v35  ;;  %v505_v39 = vmul.f32 %v2021_v60, %v1474_v35 }
  0xa7   :  { %v1507_v4 = vadd.f32 %v279_v44, %v1492_v18  ;;  %v1510_v14 = vadd.f32 %v280_v33, %v1492_v18  ;;  %v1513_v19 = vadd.f32 %v466_v43, %v1492_v18  ;;  %v1516_v11 = vadd.f32 %v467_v37, %v1492_v18 }
  0xa8   :  { %v599_v44 = vmul.f32 %v1127_v1, %v1402_v49  ;;  %v600_v33 = vmul.f32 %v1129_v2, %v1402_v49  ;;  %v1530_v37 = vmul.f32 %v1127_v1, %v1448_v9  ;;  %v1534_v43 = vmul.f32 %v1129_v2, %v1448_v9 }
  0xa9   :  { %2022 = vst [vmem:[#allocation44_spill] sm:$0xff] %v1507_v4  ;;  %2023 = vst [vmem:[#allocation45_spill] sm:$0xff] %v1510_v14  ;;  %v1522_v17 = vpop.permute.xlu1 %62  ;;  %v333_v3 = vadd.f32 %v319_v10, %v317_v57  ;;  %v346_v8 = vadd.f32 %v320_v32, %v318_v28  ;;  %v520_v12 = vadd.f32 %v506_v58, %v504_v50  ;;  %v2028_v57 = vld [vmem:[#allocation21_spill] sm:$0xff]  ;;  %v2029_v28 = vld [vmem:[#allocation22_spill] sm:$0xff] }
  0xaa   :  { %2024 = vst [vmem:[#allocation46_spill] sm:$0xff] %v1513_v19  ;;  %2025 = vst [vmem:[#allocation47_spill] sm:$0xff] %v1516_v11  ;;  %v533_v60 = vadd.f32 %v507_v42, %v505_v39  ;;  %v231_v29 = vmul.f32 %v1107_v45, %v1522_v17  ;;  %v418_v10 = vmul.f32 %v1119_v61, %v1522_v17  ;;  %v1548_v32 = vpop.permute.xlu0 %142  ;;  %v2037_v4 = vld [vmem:[#allocation29_spill] sm:$0xff] }
  0xab   :  { %2026 = vst [vmem:[#allocation48_spill] sm:$0xff] %v1522_v17  ;;  %2027 = vst [vmem:[#allocation49_spill] sm:$0xff] %v1530_v37  ;;  %v232_v37 = vmul.f32 %v1113_v55, %v1522_v17  ;;  %v419_v39 = vmul.f32 %v1121_v62, %v1522_v17  ;;  %v601_v58 = vmul.f32 %v1127_v1, %v1522_v17 }
  0xac   :  { %v602_v42 = vmul.f32 %v1129_v2, %v1522_v17  ;;  %v641_v45 = vadd.f32 %v1180_v23, %v1328_v53  ;;  %v642_v55 = vadd.f32 %v1184_v24, %v1332_v54  ;;  %v643_v61 = vadd.f32 %v1384_v40, %v1172_v21  ;;  %v2030_v53 = vld [vmem:[#allocation8_spill] sm:$0xff]  ;;  %v2031_v54 = vld [vmem:[#allocation9_spill] sm:$0xff]  ;;  %v2032_v21 = vld [vmem:[#allocation10_spill] sm:$0xff] }
  0xad   :  { %v644_v62 = vadd.f32 %v1388_v25, %v1176_v22  ;;  %v645_v1 = vadd.f32 %v1392_v26, %v2028_v57  ;;  %v646_v2 = vadd.f32 %v1396_v56, %v2029_v28  ;;  %v647_v22 = vadd.f32 %v1434_v46, %v2033_v13  ;;  %v2034_v25 = vld [vmem:[#allocation33_spill] sm:$0xff]  ;;  %v2035_v57 = vld [vmem:[#allocation23_spill] sm:$0xff]  ;;  %v2036_v28 = vld [vmem:[#allocation24_spill] sm:$0xff] }
  0xae   :  { %v1558_v50 = vpop.permute.xlu1 %95  ;;  %v648_v26 = vadd.f32 %v1438_v0, %v2034_v25  ;;  %v649_v56 = vadd.f32 %v2035_v57, %v599_v44  ;;  %v650_v35 = vadd.f32 %v2036_v28, %v600_v33  ;;  %v1588_v13 = vadd.f32 %v1442_v63, %v2037_v4  ;;  %v1594_v0 = vpop.permute.xlu0 %147 }
  0xaf   :  { %v265_v23 = vmul.f32 %v1115_v59, %v1558_v50  ;;  %v266_v24 = vmul.f32 %v2030_v53, %v1558_v50  ;;  %v452_v49 = vmul.f32 %v2031_v54, %v1558_v50  ;;  %v453_v40 = vmul.f32 %v2032_v21, %v1558_v50 }
  0xb0   :  { %v635_v19 = vmul.f32 %v1135_v5, %v1558_v50  ;;  %v636_v14 = vmul.f32 %v1137_v6, %v1558_v50  ;;  %v1592_v46 = vadd.f32 %v1446_v41, %v2037_v4  ;;  %v2038_v63 = vmax.f32 %v1361_v47, 0.0  ;;  %v2043_v47 = vld [vmem:[#allocation31_spill] sm:$0xff] }
  0xb1   :  { %v281_v20 = vadd.f32 %v265_v23, %v231_v29  ;;  %v282_v9 = vadd.f32 %v266_v24, %v232_v37  ;;  %v468_v17 = vadd.f32 %v452_v49, %v418_v10  ;;  %v469_v11 = vadd.f32 %v453_v40, %v419_v39  ;;  %v2042_v40 = vld [vmem:[#allocation30_spill] sm:$0xff] }
  0xb2   :  { %v2039_v41 = vmax.f32 %v1364_v48, 0.0  ;;  %v2040_v23 = vmax.f32 %v1367_v51, 0.0  ;;  %v1621_v25 = vadd.f32 %v643_v61, %v2043_v47  ;;  %v1624_v48 = vadd.f32 %v644_v62, %v2043_v47  ;;  %v1634_v62 = vpop.permute.xlu0 %190 }
  0xb3   :  { %v1596_v29 = vpop.permute.xlu1 %170  ;;  %v297_v49 = vadd.f32 %v281_v20, %v1548_v32  ;;  %v298_v44 = vadd.f32 %v282_v9, %v1548_v32  ;;  %v484_v33 = vadd.f32 %v468_v17, %v1548_v32  ;;  %v485_v37 = vadd.f32 %v469_v11, %v1548_v32 }
  0xb4   :  { %v321_v10 = vmul.f32 %v2038_v63, %v1596_v29  ;;  %v322_v39 = vmul.f32 %v2039_v41, %v1596_v29  ;;  %v508_v24 = vmul.f32 %v2040_v23, %v1596_v29  ;;  %v2041_v20 = vmax.f32 %v1370_v52, 0.0 }
  0xb5   :  { %v1615_v17 = vadd.f32 %v641_v45, %v2042_v40  ;;  %v1618_v11 = vadd.f32 %v642_v55, %v2042_v40  ;;  %v313_v57 = vmax.f32 %v297_v49, 0.0  ;;  %v314_v28 = vmax.f32 %v298_v44, 0.0 }
  0xb6   :  { %v509_v9 = vmul.f32 %v2041_v20, %v1596_v29  ;;  %v500_v51 = vmax.f32 %v484_v33, 0.0  ;;  %v501_v63 = vmax.f32 %v485_v37, 0.0  ;;  %v651_v41 = vadd.f32 %v635_v19, %v601_v58 }
  0xb7   :  { %v652_v23 = vadd.f32 %v636_v14, %v602_v42  ;;  %v1627_v52 = vadd.f32 %v645_v1, %v1430_v27  ;;  %v1630_v45 = vadd.f32 %v646_v2, %v1430_v27  ;;  %v334_v20 = vadd.f32 %v333_v3, %v321_v10 }
  0xb8   :  { %v1632_v55 = vpop.permute.xlu1 %99  ;;  %v347_v61 = vadd.f32 %v346_v8, %v322_v39  ;;  %v521_v40 = vadd.f32 %v520_v12, %v508_v24  ;;  %v534_v4 = vadd.f32 %v533_v60, %v509_v9  ;;  %v1645_v42 = vmul.f32 %v313_v57, %v1634_v62 }
  0xb9   :  { %v267_v49 = vmul.f32 %v1115_v59, %v1632_v55  ;;  %v268_v14 = vmul.f32 %v2030_v53, %v1632_v55  ;;  %v454_v19 = vmul.f32 %v2031_v54, %v1632_v55  ;;  %v455_v58 = vmul.f32 %v2032_v21, %v1632_v55  ;;  %v2044_v21 = vld [vmem:[#allocation37_spill] sm:$0xff] }
  0xba   :  { %v1648_v12 = vmul.f32 %v314_v28, %v1634_v62  ;;  %v1651_v8 = vmul.f32 %v500_v51, %v1634_v62  ;;  %v1654_v59 = vmul.f32 %v501_v63, %v1634_v62  ;;  %v637_v53 = vmul.f32 %v1135_v5, %v1632_v55  ;;  %v2049_v51 = vld [vmem:[#allocation49_spill] sm:$0xff] }
  0xbb   :  { %v283_v60 = vadd.f32 %v267_v49, %v1478_v36  ;;  %v284_v3 = vadd.f32 %v268_v14, %v1482_v38  ;;  %v470_v1 = vadd.f32 %v454_v19, %v1486_v15  ;;  %v471_v2 = vadd.f32 %v455_v58, %v1490_v16 }
  0xbc   :  { %v638_v54 = vmul.f32 %v1137_v6, %v1632_v55  ;;  %v1665_v44 = vadd.f32 %v647_v22, %v2044_v21  ;;  %v1668_v33 = vadd.f32 %v648_v26, %v2044_v21  ;;  %v1677_v5 = vadd.f32 %v649_v56, %v1492_v18 }
  0xbd   :  { %v1670_v37 = vpop.permute.xlu1 %175  ;;  %v299_v36 = vadd.f32 %v283_v60, %v1594_v0  ;;  %v300_v38 = vadd.f32 %v284_v3, %v1594_v0  ;;  %v486_v15 = vadd.f32 %v470_v1, %v1594_v0  ;;  %v487_v16 = vadd.f32 %v471_v2, %v1594_v0 }
  0xbe   :  { %v1680_v6 = vadd.f32 %v650_v35, %v1492_v18  ;;  %v1683_v22 = vadd.f32 %v651_v41, %v1548_v32  ;;  %v1686_v26 = vadd.f32 %v652_v23, %v1548_v32  ;;  %v2045_v10 = vmax.f32 %v1460_v7, 0.0 }
  0xbf   :  { %v2046_v24 = vmax.f32 %v1464_v30, 0.0  ;;  %v2047_v56 = vmax.f32 %v1468_v31, 0.0  ;;  %v2048_v35 = vmax.f32 %v1472_v34, 0.0  ;;  %v653_v63 = vadd.f32 %v637_v53, %v2049_v51  ;;  %v2050_v31 = vld [vmem:[#allocation38_spill] sm:$0xff]  ;;  %v2052_v34 = vld [vmem:[#allocation39_spill] sm:$0xff] }
  0xc0   :  { %v323_v39 = vmul.f32 %v2045_v10, %v1670_v37  ;;  %v654_v41 = vadd.f32 %v638_v54, %v1534_v43  ;;  %v671_v23 = vmax.f32 %v1588_v13, 0.0  ;;  %v672_v7 = vmax.f32 %v1592_v46, 0.0  ;;  %v2054_v43 = vld [vmem:[#allocation40_spill] sm:$0xff]  ;;  %v2056_v46 = vld [vmem:[#allocation41_spill] sm:$0xff] }
  0xc1   :  { %v324_v9 = vmul.f32 %v2046_v24, %v1670_v37  ;;  %v510_v57 = vmul.f32 %v2047_v56, %v1670_v37  ;;  %v511_v28 = vmul.f32 %v2048_v35, %v1670_v37  ;;  %v1704_v49 = vpop.permute.xlu1 %180  ;;  %v315_v30 = vmax.f32 %v299_v36, 0.0 }
  0xc2   :  { %v316_v14 = vmax.f32 %v300_v38, 0.0  ;;  %v502_v19 = vmax.f32 %v486_v15, 0.0  ;;  %v503_v58 = vmax.f32 %v487_v16, 0.0  ;;  %v2051_v60 = vmax.f32 %v2050_v31, 0.0 }
  0xc3   :  { %v2053_v1 = vmax.f32 %v2052_v34, 0.0  ;;  %v2055_v53 = vmax.f32 %v2054_v43, 0.0  ;;  %v2057_v54 = vmax.f32 %v2056_v46, 0.0  ;;  %v335_v36 = vadd.f32 %v334_v20, %v323_v39  ;;  %v2058_v20 = vld [vmem:[#allocation44_spill] sm:$0xff] }
  0xc4   :  { %v325_v3 = vmul.f32 %v2051_v60, %v1704_v49  ;;  %v348_v38 = vadd.f32 %v347_v61, %v324_v9  ;;  %v522_v15 = vadd.f32 %v521_v40, %v510_v57  ;;  %v535_v16 = vadd.f32 %v534_v4, %v511_v28  ;;  %v2060_v61 = vld [vmem:[#allocation45_spill] sm:$0xff]  ;;  %v2062_v57 = vld [vmem:[#allocation46_spill] sm:$0xff] }
  0xc5   :  { %v326_v2 = vmul.f32 %v2053_v1, %v1704_v49  ;;  %v512_v13 = vmul.f32 %v2055_v53, %v1704_v49  ;;  %v513_v10 = vmul.f32 %v2057_v54, %v1704_v49  ;;  %v1719_v24 = vadd.f32 %v653_v63, %v1594_v0  ;;  %v1726_v31 = vpop.permute.xlu1 %185 }
  0xc6   :  { %v1722_v56 = vadd.f32 %v654_v41, %v1594_v0  ;;  %v673_v35 = vmax.f32 %v1615_v17, 0.0  ;;  %v674_v51 = vmax.f32 %v1618_v11, 0.0  ;;  %v336_v60 = vadd.f32 %v335_v36, %v325_v3  ;;  %v2064_v11 = vld [vmem:[#allocation47_spill] sm:$0xff] }
  0xc7   :  { %v349_v34 = vadd.f32 %v348_v38, %v326_v2  ;;  %v523_v1 = vadd.f32 %v522_v15, %v512_v13  ;;  %v536_v43 = vadd.f32 %v535_v16, %v513_v10  ;;  %v2059_v40 = vmax.f32 %v2058_v20, 0.0 }
  0xc8   :  { %v2061_v39 = vmax.f32 %v2060_v61, 0.0  ;;  %v2063_v28 = vmax.f32 %v2062_v57, 0.0  ;;  %v2065_v63 = vmax.f32 %v2064_v11, 0.0  ;;  %v675_v3 = vmax.f32 %v1621_v25, 0.0  ;;  %v2067_v61 = vld [vmem:[#allocation43_spill] sm:$0xff] }
  0xc9   :  { %v327_v4 = vmul.f32 %v2059_v40, %v1726_v31  ;;  %v676_v2 = vmax.f32 %v1624_v48, 0.0  ;;  %v677_v53 = vmax.f32 %v1627_v52, 0.0  ;;  %v678_v13 = vmax.f32 %v1630_v45, 0.0  ;;  %v1744_v38 = vpop.permute.xlu1 %195 }
  0xca   :  { %v328_v9 = vmul.f32 %v2061_v39, %v1726_v31  ;;  %v514_v17 = vmul.f32 %v2063_v28, %v1726_v31  ;;  %v515_v41 = vmul.f32 %v2065_v63, %v1726_v31  ;;  %2066 = vst [vmem:[#allocation21_spill] sm:$0xff] %v1744_v38  ;;  %v679_v15 = vmax.f32 %v1665_v44, 0.0 }
  0xcb   :  { %v337_v46 = vadd.f32 %v336_v60, %v327_v4  ;;  %v680_v16 = vmax.f32 %v1668_v33, 0.0  ;;  %v681_v20 = vmax.f32 %v1677_v5, 0.0  ;;  %v682_v25 = vmax.f32 %v1680_v6, 0.0 }
  0xcc   :  { %v350_v54 = vadd.f32 %v349_v34, %v328_v9  ;;  %v524_v10 = vadd.f32 %v523_v1, %v514_v17  ;;  %v537_v36 = vadd.f32 %v536_v43, %v515_v41  ;;  %v331_v48 = vmul.f32 %v315_v30, %v1744_v38  ;;  %v2068_v9 = vld [vmem:[#allocation35_spill] sm:$0xff] }
  0xcd   :  { %v332_v52 = vmul.f32 %v316_v14, %v1744_v38  ;;  %v338_v45 = vadd.f32 %v337_v46, %v1645_v42  ;;  %v518_v34 = vmul.f32 %v502_v19, %v1744_v38  ;;  %v519_v1 = vmul.f32 %v503_v58, %v1744_v38 }
  0xce   :  { %v351_v60 = vadd.f32 %v350_v54, %v1648_v12  ;;  %v525_v44 = vadd.f32 %v524_v10, %v1651_v8  ;;  %v538_v33 = vadd.f32 %v537_v36, %v1654_v59  ;;  %v683_v6 = vmax.f32 %v1683_v22, 0.0 }
  0xcf   :  { %v339_v43 = vadd.f32 %v338_v45, %v331_v48  ;;  %v684_v30 = vmax.f32 %v1686_v26, 0.0  ;;  %v685_v42 = vmax.f32 %v1719_v24, 0.0  ;;  %v686_v12 = vmax.f32 %v1722_v56, 0.0 }
  0xd0   :  { %v352_v5 = vadd.f32 %v351_v60, %v332_v52  ;;  %v526_v40 = vadd.f32 %v525_v44, %v518_v34  ;;  %v539_v14 = vadd.f32 %v538_v33, %v519_v1  ;;  %v687_v58 = vmul.f32 %v671_v23, %v2067_v61 }
  0xd1   :  { %v340_v4 = vrot.slane %v339_v43, 4  ;;  %v688_v8 = vmul.f32 %v672_v7, %v2067_v61  ;;  %v689_v57 = vmul.f32 %v673_v35, %v2068_v9  ;;  %v690_v22 = vmul.f32 %v674_v51, %v2068_v9 }
  0xd2   :  { %v353_v19 = vrot.slane %v352_v5, 4  ;;  %v527_v39 = vrot.slane %v526_v40, 4  ;;  %v540_v59 = vrot.slane %v539_v14, 4  ;;  %v691_v17 = vmul.f32 %v675_v3, %v1596_v29 }
  0xd3   :  { %v341_v28 = vadd.f32 %v340_v4, %v339_v43  ;;  %v692_v24 = vmul.f32 %v676_v2, %v1596_v29  ;;  %v693_v63 = vmul.f32 %v677_v53, %v1670_v37  ;;  %v694_v23 = vmul.f32 %v678_v13, %v1670_v37 }
  0xd4   :  { %v354_v26 = vadd.f32 %v353_v19, %v352_v5  ;;  %v528_v11 = vadd.f32 %v527_v39, %v526_v40  ;;  %v541_v56 = vadd.f32 %v540_v59, %v539_v14  ;;  %v703_v46 = vadd.f32 %v689_v57, %v687_v58  ;;  %v2069_v39 = vld [vmem:[#allocation15_spill] sm:$0xff] }
  0xd5   :  { %v342_v41 = vrot.slane %v341_v28, 2  ;;  %v716_v54 = vadd.f32 %v690_v22, %v688_v8  ;;  %v695_v51 = vmul.f32 %v679_v15, %v1704_v49  ;;  %v696_v36 = vmul.f32 %v680_v16, %v1704_v49 }
  0xd6   :  { %v355_v7 = vrot.slane %v354_v26, 2  ;;  %v529_v10 = vrot.slane %v528_v11, 2  ;;  %v542_v35 = vrot.slane %v541_v56, 2  ;;  %v704_v52 = vadd.f32 %v703_v46, %v691_v17  ;;  %v2076_v46 = vld [vmem:[#allocation11_spill] sm:$0xff] }
  0xd7   :  { %v343_v48 = vadd.f32 %v342_v41, %v341_v28  ;;  %v717_v2 = vadd.f32 %v716_v54, %v692_v24  ;;  %v697_v53 = vmul.f32 %v681_v20, %v1726_v31  ;;  %v698_v13 = vmul.f32 %v682_v25, %v1726_v31  ;;  %v2073_v24 = vld [vmem:[#allocation6_spill] sm:$0xff] }
  0xd8   :  { %v356_v3 = vadd.f32 %v355_v7, %v354_v26  ;;  %v530_v45 = vadd.f32 %v529_v10, %v528_v11  ;;  %v543_v60 = vadd.f32 %v542_v35, %v541_v56  ;;  %v705_v44 = vadd.f32 %v704_v52, %v693_v63  ;;  %v2074_v11 = vld [vmem:[#allocation13_spill] sm:$0xff]  ;;  %v2077_v10 = vld [vmem:[#allocation7_spill] sm:$0xff] }
  0xd9   :  { %v344_v34 = vrot.slane %v343_v48, 1  ;;  %v718_v33 = vadd.f32 %v717_v2, %v694_v23  ;;  %v699_v15 = vmul.f32 %v683_v6, %v1634_v62  ;;  %v700_v16 = vmul.f32 %v684_v30, %v1634_v62  ;;  %v2075_v23 = vld [vmem:[#allocation14_spill] sm:$0xff]  ;;  %v2078_v35 = vld [vmem:[#allocation17_spill] sm:$0xff] }
  0xda   :  { %v357_v1 = vrot.slane %v356_v3, 1  ;;  %v531_v43 = vrot.slane %v530_v45, 1  ;;  %v544_v5 = vrot.slane %v543_v60, 1  ;;  %v706_v4 = vadd.f32 %v705_v44, %v695_v51 }
  0xdb   :  { %v345_v40 = vadd.f32 %v344_v34, %v343_v48  ;;  %v719_v19 = vadd.f32 %v718_v33, %v696_v36  ;;  %v701_v20 = vmul.f32 %v685_v42, %v1744_v38  ;;  %v702_v25 = vmul.f32 %v686_v12, %v1744_v38  ;;  %v2079_v36 = vld [vmem:[#allocation18_spill] sm:$0xff] }
  0xdc   :  { %v358_v14 = vadd.f32 %v357_v1, %v356_v3  ;;  %v532_v58 = vadd.f32 %v531_v43, %v530_v45  ;;  %v545_v8 = vadd.f32 %v544_v5, %v543_v60  ;;  %v707_v22 = vadd.f32 %v706_v4, %v697_v53  ;;  %v2080_v3 = vld [vmem:[#allocation16_spill] sm:$0xff] }
  0xdd   :  { %v360_v59 = vadd.f32 %v2069_v39, %v345_v40  ;;  %v720_v28 = vadd.f32 %v719_v19, %v698_v13  ;;  %v2070_v26 = vlaneseq  ;;  %v1789_v42 = vmul.f32 %v2074_v11, %v2073_v24  ;;  %v2081_v13 = vld [vmem:[#allocation19_spill] sm:$0xff]  ;;  %v2082_v1 = vld [vmem:[#allocation12_spill] sm:$0xff] }
  0xde   :  { %v361_v57 = vadd.f32 %v2069_v39, %v358_v14  ;;  %v546_v30 = vadd.f32 %v532_v58, %v2069_v39  ;;  %v547_v17 = vadd.f32 %v545_v8, %v2069_v39  ;;  %v708_v56 = vadd.f32 %v707_v22, %v699_v15  ;;  %v2083_v14 = vld [vmem:[#allocation25_spill] sm:$0xff]  ;;  %v2084_v58 = vld [vmem:[#allocation27_spill] sm:$0xff] }
  0xdf   :  { %vm1781_vm0 = vcmp.lt.s32.totalorder %v2070_v26, 256  ;;  %v721_v63 = vadd.f32 %v720_v28, %v700_v16  ;;  %v777_v41 = vmul.f32 %v2075_v23, %v2073_v24  ;;  %v778_v54 = vmul.f32 %v2074_v11, %v2076_v46  ;;  %v2086_v26 = vld [vmem:[#allocation48_spill] sm:$0xff] }
  0xe0   :  { %v364_v12 = vcombine.low %v360_v59, %v361_v57  ;;  %v550_v7 = vcombine.low %v546_v30, %v547_v17  ;;  %v808_v51 = vmul.f32 %v2078_v35, %v2077_v10  ;;  %v809_v48 = vmul.f32 %v2079_v36, %v2077_v10  ;;  %v2085_v59 = vld [vmem:[#allocation36_spill] sm:$0xff] }
  0xe1   :  { %v709_v2 = vadd.f32 %v708_v56, %v701_v20  ;;  %v722_v45 = vadd.f32 %v721_v63, %v702_v25  ;;  %v779_v60 = vmul.f32 %v2075_v23, %v2076_v46  ;;  %v772_v34 = vmul.f32 %v2074_v11, %v2081_v13 }
  0xe2   :  { %v371_v52 = vrot.slane %v364_v12, %v2080_v3  ;;  %v557_v53 = vrot.slane %v550_v7, %v2080_v3  ;;  %v816_v44 = vmul.f32 %v2078_v35, %v2082_v1  ;;  %v817_v33 = vmul.f32 %v2079_v36, %v2082_v1  ;;  %v2087_v7 = vld [vmem:[#allocation42_spill] sm:$0xff] }
  0xe3   :  { %v710_v5 = vrot.slane %v709_v2, 4  ;;  %v723_v15 = vrot.slane %v722_v45, 4  ;;  %v773_v16 = vmul.f32 %v2075_v23, %v2081_v13  ;;  %v774_v4 = vmul.f32 %v2074_v11, %v2083_v14 }
  0xe4   :  { %v378_v43 = vrot.slane %v371_v52, %v2080_v3  ;;  %v564_v40 = vrot.slane %v557_v53, %v2080_v3  ;;  %v775_v19 = vmul.f32 %v2075_v23, %v2083_v14  ;;  %v780_v8 = vmul.f32 %v2074_v11, %v2084_v58  ;;  %v2088_v52 = vld [vmem:[#allocation20_spill] sm:$0xff]  ;;  %v2089_v53 = vld [vmem:[#allocation26_spill] sm:$0xff] }
  0xe5   :  { %v711_v20 = vadd.f32 %v710_v5, %v709_v2  ;;  %v724_v25 = vadd.f32 %v723_v15, %v722_v45  ;;  %v782_v57 = vmul.f32 %v2074_v11, %v2085_v59  ;;  %v783_v22 = vmul.f32 %v2075_v23, %v2085_v59 }
  0xe6   :  { %384 = vst.msk [vmem:[#allocation3] sm:$0x3] %vm1781_vm0, %v378_v43  ;;  %567 = vst.msk [vmem:[#allocation3 + $0x2] sm:$0x3] %vm1781_vm0, %v564_v40  ;;  %v781_v28 = vmul.f32 %v2075_v23, %v2084_v58  ;;  %v784_v30 = vmul.f32 %v2074_v11, %v2086_v26  ;;  %v818_v17 = vmul.f32 %v2078_v35, %v1558_v50 }
  0xe7   :  { %v819_v24 = vmul.f32 %v2079_v36, %v1558_v50  ;;  %v712_v12 = vrot.slane %v711_v20, 2  ;;  %v725_v56 = vrot.slane %v724_v25, 2  ;;  %v785_v63 = vmul.f32 %v2075_v23, %v2086_v26 }
  0xe8   :  { %v786_v46 = vmul.f32 %v2074_v11, %v2087_v7  ;;  %v787_v10 = vmul.f32 %v2075_v23, %v2087_v7  ;;  %v806_v2 = vmul.f32 %v2078_v35, %v2088_v52  ;;  %v807_v45 = vmul.f32 %v2079_v36, %v2088_v52  ;;  %v2090_v11 = vld [vmem:[#allocation28_spill] sm:$0xff]  ;;  %v2091_v7 = vld [vmem:[#allocation34_spill] sm:$0xff] }
  0xe9   :  { %v810_v50 = vmul.f32 %v2078_v35, %v2089_v53  ;;  %v713_v13 = vadd.f32 %v712_v12, %v711_v20  ;;  %v726_v1 = vadd.f32 %v725_v56, %v724_v25  ;;  %v832_v43 = vadd.f32 %v816_v44, %v782_v57 }
  0xea   :  { %v833_v5 = vadd.f32 %v817_v33, %v783_v22  ;;  %v811_v15 = vmul.f32 %v2079_v36, %v2089_v53  ;;  %v812_v40 = vmul.f32 %v2078_v35, %v2090_v11  ;;  %v834_v23 = vadd.f32 %v818_v17, %v784_v30 }
  0xeb   :  { %v835_v14 = vadd.f32 %v819_v24, %v785_v63  ;;  %v714_v58 = vrot.slane %v713_v13, 1  ;;  %v727_v59 = vrot.slane %v726_v1, 1  ;;  %v813_v26 = vmul.f32 %v2079_v36, %v2090_v11 }
  0xec   :  { %v814_v52 = vmul.f32 %v2078_v35, %v2091_v7  ;;  %v815_v44 = vmul.f32 %v2079_v36, %v2091_v7  ;;  %v820_v33 = vmul.f32 %v2078_v35, %v1632_v55  ;;  %v822_v20 = vadd.f32 %v806_v2, %v772_v34  ;;  %v2092_v7 = vld [vmem:[#allocation29_spill] sm:$0xff]  ;;  %v2093_v34 = vld [vmem:[#allocation30_spill] sm:$0xff] }
  0xed   :  { %v824_v25 = vadd.f32 %v808_v51, %v774_v4  ;;  %v715_v57 = vadd.f32 %v714_v58, %v713_v13  ;;  %v728_v22 = vadd.f32 %v727_v59, %v726_v1  ;;  %v823_v30 = vadd.f32 %v807_v45, %v773_v16 }
  0xee   :  { %v825_v17 = vadd.f32 %v809_v48, %v775_v19  ;;  %v821_v24 = vmul.f32 %v2079_v36, %v1632_v55  ;;  %v826_v12 = vadd.f32 %v810_v50, %v1789_v42  ;;  %v827_v56 = vadd.f32 %v811_v15, %v777_v41 }
  0xef   :  { %v828_v63 = vadd.f32 %v812_v40, %v778_v54  ;;  %v729_v53 = vadd.f32 %v715_v57, %v2069_v39  ;;  %v730_v11 = vadd.f32 %v728_v22, %v2069_v39  ;;  %v838_v38 = vadd.f32 %v822_v20, %v2092_v7 }
  0xf0   :  { %v839_v35 = vadd.f32 %v823_v30, %v2092_v7  ;;  %v829_v51 = vadd.f32 %v813_v26, %v779_v60  ;;  %v840_v4 = vadd.f32 %v824_v25, %v2093_v34  ;;  %v842_v48 = vadd.f32 %v826_v12, %v2043_v47 }
  0xf1   :  { %v843_v16 = vadd.f32 %v827_v56, %v2043_v47  ;;  %v733_v55 = vcombine.low %v729_v53, %v730_v11  ;;  %v830_v36 = vadd.f32 %v814_v52, %v780_v8  ;;  %v831_v42 = vadd.f32 %v815_v44, %v781_v28 }
  0xf2   :  { %v841_v41 = vadd.f32 %v825_v17, %v2093_v34  ;;  %v836_v54 = vadd.f32 %v820_v33, %v786_v46  ;;  %v837_v19 = vadd.f32 %v821_v24, %v787_v10  ;;  %v844_v2 = vadd.f32 %v828_v63, %v1430_v27 }
  0xf3   :  { %v845_v45 = vadd.f32 %v829_v51, %v1430_v27  ;;  %v740_v50 = vrot.slane %v733_v55, %v2080_v3  ;;  %v846_v60 = vadd.f32 %v830_v36, %v2044_v21  ;;  %v854_v13 = vmax.f32 %v838_v38, 0.0 }
  0xf4   :  { %v855_v1 = vmax.f32 %v839_v35, 0.0  ;;  %v847_v15 = vadd.f32 %v831_v42, %v2044_v21  ;;  %v856_v47 = vmax.f32 %v840_v4, 0.0  ;;  %v858_v40 = vmax.f32 %v842_v48, 0.0  ;;  %v2094_v48 = vld [vmem:[#allocation21_spill] sm:$0xff] }
  0xf5   :  { %v859_v8 = vmax.f32 %v843_v16, 0.0  ;;  %v747_v28 = vrot.slane %v740_v50, %v2080_v3  ;;  %v857_v58 = vmax.f32 %v841_v41, 0.0  ;;  %v870_v46 = vmul.f32 %v854_v13, %v2067_v61 }
  0xf6   :  { %v871_v10 = vmul.f32 %v855_v1, %v2067_v61  ;;  %v848_v27 = vadd.f32 %v832_v43, %v1492_v18  ;;  %v849_v59 = vadd.f32 %v833_v5, %v1492_v18  ;;  %v874_v26 = vmul.f32 %v858_v40, %v1596_v29 }
  0xf7   :  { %v875_v38 = vmul.f32 %v859_v8, %v1596_v29  ;;  %750 = vst.msk [vmem:[#allocation3 + $0x4] sm:$0x3] %vm1781_vm0, %v747_v28  ;;  %v860_v21 = vmax.f32 %v844_v2, 0.0  ;;  %v861_v52 = vmax.f32 %v845_v45, 0.0  ;;  %v872_v44 = vmul.f32 %v856_v47, %v2068_v9 }
  0xf8   :  { %v873_v33 = vmul.f32 %v857_v58, %v2068_v9  ;;  %v850_v20 = vadd.f32 %v834_v23, %v1548_v32  ;;  %v851_v61 = vadd.f32 %v835_v14, %v1548_v32  ;;  %v862_v43 = vmax.f32 %v846_v60, 0.0 }
  0xf9   :  { %v863_v25 = vmax.f32 %v847_v15, 0.0  ;;  %v876_v18 = vmul.f32 %v860_v21, %v1670_v37  ;;  %v877_v5 = vmul.f32 %v861_v52, %v1670_v37  ;;  %v886_v29 = vadd.f32 %v872_v44, %v870_v46 }
  0xfa   :  { %v899_v57 = vadd.f32 %v873_v33, %v871_v10  ;;  %v852_v22 = vadd.f32 %v836_v54, %v1594_v0  ;;  %v853_v30 = vadd.f32 %v837_v19, %v1594_v0  ;;  %v864_v17 = vmax.f32 %v848_v27, 0.0 }
  0xfb   :  { %v865_v24 = vmax.f32 %v849_v59, 0.0  ;;  %v878_v9 = vmul.f32 %v862_v43, %v1704_v49  ;;  %v879_v23 = vmul.f32 %v863_v25, %v1704_v49  ;;  %v887_v12 = vadd.f32 %v886_v29, %v874_v26 }
  0xfc   :  { %v900_v32 = vadd.f32 %v899_v57, %v875_v38  ;;  %v866_v14 = vmax.f32 %v850_v20, 0.0  ;;  %v867_v56 = vmax.f32 %v851_v61, 0.0  ;;  %v880_v63 = vmul.f32 %v864_v17, %v1726_v31 }
  0xfd   :  { %v881_v37 = vmul.f32 %v865_v24, %v1726_v31  ;;  %v888_v53 = vadd.f32 %v887_v12, %v876_v18  ;;  %v868_v7 = vmax.f32 %v852_v22, 0.0  ;;  %v869_v35 = vmax.f32 %v853_v30, 0.0 }
  0xfe   :  { %v901_v11 = vadd.f32 %v900_v32, %v877_v5  ;;  %v882_v34 = vmul.f32 %v866_v14, %v1634_v62  ;;  %v883_v4 = vmul.f32 %v867_v56, %v1634_v62 }
  0xff   :  { %v889_v51 = vadd.f32 %v888_v53, %v878_v9  ;;  %v884_v49 = vmul.f32 %v868_v7, %v2094_v48  ;;  %v885_v16 = vmul.f32 %v869_v35, %v2094_v48 }
 0x100   :  { %v902_v0 = vadd.f32 %v901_v11, %v879_v23 }
 0x101   :  { %v890_v55 = vadd.f32 %v889_v51, %v880_v63 }
 0x102   :  { %v903_v36 = vadd.f32 %v902_v0, %v881_v37 }
 0x103   :  { %v891_v42 = vadd.f32 %v890_v55, %v882_v34 }
 0x104   :  { %v904_v41 = vadd.f32 %v903_v36, %v883_v4 }
 0x105   :  { %v892_v54 = vadd.f32 %v891_v42, %v884_v49 }
 0x106   :  { %v905_v31 = vadd.f32 %v904_v41, %v885_v16 }
 0x107   :  { %v893_v19 = vrot.slane %v892_v54, 4 }
 0x108   :  { %v906_v2 = vrot.slane %v905_v31, 4 }
 0x109   :  { %v894_v45 = vadd.f32 %v893_v19, %v892_v54 }
 0x10a   :  { %v907_v50 = vadd.f32 %v906_v2, %v905_v31 }
 0x10b   :  { %v895_v60 = vrot.slane %v894_v45, 2 }
 0x10c   :  { %v908_v13 = vrot.slane %v907_v50, 2 }
 0x10d   :  { %v896_v1 = vadd.f32 %v895_v60, %v894_v45 }
 0x10e   :  { %v909_v15 = vadd.f32 %v908_v13, %v907_v50 }
 0x10f   :  { %v897_v47 = vrot.slane %v896_v1, 1 }
 0x110   :  { %v910_v62 = vrot.slane %v909_v15, 1 }
 0x111   :  { %v898_v40 = vadd.f32 %v897_v47, %v896_v1 }
 0x112   :  { %v911_v8 = vadd.f32 %v910_v62, %v909_v15 }
 0x113   :  { %v912_v28 = vadd.f32 %v898_v40, %v2069_v39 }
 0x114   :  { %v913_v58 = vadd.f32 %v911_v8, %v2069_v39 }
 0x116   :  { %v916_v46 = vcombine.low %v912_v28, %v913_v58 }
 0x118   :  { %v923_v10 = vrot.slane %v916_v46, %v2080_v3 }
 0x11a   :  { %v930_v27 = vrot.slane %v923_v10, %v2080_v3 }
 0x11c   :  { %933 = vst.msk [vmem:[#allocation3 + $0x6] sm:$0x3] %vm1781_vm0, %v930_v27 }
 0x11d   :  { %977 = shalt.err (!%p974_p4)
}
 0x11e   :  { %943 = dma.vmem_to_hbm [thread:$0]  %s941_s22, 128, %s1914_s5, [#allocation4]  }
 0x11f   :  { %986 = dma.done.wait [#allocation4], 128  }
 0x120   :  { %987 = vsyncadd [#allocation4], 4294967168 }
 0x121   :  { %947 = vsyncpa [#allocation4], 1 }

</bundles_post_ra>
